<compile_context>
chip_gen: v7x
topology: tpu7x:2x2x1
jax: 0.10.0
libtpu: 0.0.40
codegen_flags: <defaults>
</compile_context>

<pallas_src>
import jax
import jax.numpy as jnp
from jax.experimental import pallas as pl
from jax.experimental.pallas import tpu as pltpu

EPS = 1e-5  # nn.BatchNorm1d default


def _gbn_kernel(x_ref, gamma_ref, beta_ref, o_ref):
    # x_ref: (G, VBS, D) -- G ghost batches, normalized independently.
    # Compute in f32 regardless of the streamed dtype.
    x = x_ref[...].astype(jnp.float32)

    # Per-ghost-batch, per-feature statistics (biased variance, as PyTorch
    # uses for normalization in training mode).  Two-pass form for stability;
    # the (x - mean)**2 term is consumed immediately by the reduction, so no
    # block-sized temporary needs to stay live for the output expression.
    mean = jnp.mean(x, axis=1, keepdims=True)                        # (G, 1, D)
    var = jnp.mean((x - mean) ** 2, axis=1, keepdims=True)           # (G, 1, D)

    # Fused affine:  y = x * scale + shift, with per-(G, D) scale/shift.
    scale = jax.lax.rsqrt(var + EPS) * gamma_ref[...]                # (G, 1, D)
    shift = beta_ref[...] - mean * scale                             # (G, 1, D)
    o_ref[...] = (x * scale + shift).astype(o_ref.dtype)


def _round_up(x, m):
    return ((x + m - 1) // m) * m


def _vmem_budget():
    """(accounting budget for blocks+temps, scoped vmem limit) in bytes."""
    try:
        cap = getattr(pltpu.get_tpu_info(), "vmem_capacity_bytes", 64 << 20)
    except Exception:  # pragma: no cover - be robust if the query is absent
        cap = 64 << 20
    if cap >= (128 << 20):      # v5e / v6e: 128 MiB physical VMEM
        return 48 << 20, 80 << 20
    return 20 << 20, 40 << 20   # v7x: 64 MiB physical VMEM per TC


def _per_chunk_vmem_bytes(vbs, d, io_itemsize):
    """VMEM bytes one ghost batch contributes, incl. padding and temporaries."""
    lane_d = _round_up(d, 128)                              # lane padding
    sub_io = _round_up(vbs, max(1, 32 // io_itemsize))      # sublane pack (8 f32 / 16 bf16)
    sub_f32 = _round_up(vbs, 8)
    streamed = 4 * sub_io * lane_d * io_itemsize            # 2x in + 2x out double-buffers
    temps = 2 * sub_f32 * lane_d * 4                        # f32 upcast + one transient
    return streamed + temps


def _choose_group(n_chunks, per_chunk_bytes, budget_bytes, min_grid=4):
    """Largest G dividing n_chunks s.t. VMEM fits and the grid keeps >= min_grid
    steps (>= 2 per TensorCore on v7x megacore) whenever n_chunks allows it."""
    best = 1
    for g in range(1, n_chunks + 1):
        if g * per_chunk_bytes > budget_bytes:
            break  # bytes grow monotonically with g
        if n_chunks % g:
            continue
        if n_chunks >= min_grid and (n_chunks // g) < min_grid:
            continue
        best = g
    return best


def gbn_forward(x, gamma, beta, virtual_batch_size):
    """Ghost Batch Norm forward (training-mode statistics).

    x:     (B, D), any float dtype (streamed as-is; compute is f32 in-kernel)
    gamma: (D,)
    beta:  (D,)
    """
    B, D = x.shape
    assert B % virtual_batch_size == 0, "kernel assumes B % VBS == 0"
    n_chunks = B // virtual_batch_size

    budget_bytes, vmem_limit_bytes = _vmem_budget()
    per_chunk = _per_chunk_vmem_bytes(virtual_batch_size, D, x.dtype.itemsize)
    G = _choose_group(n_chunks, per_chunk, budget_bytes)
    grid = (n_chunks // G,)

    # Free row-major reshape: each grid step sees G full ghost batches.
    x3 = x.reshape(n_chunks, virtual_batch_size, D)
    gamma3 = gamma.reshape(1, 1, D).astype(jnp.float32)
    beta3 = beta.reshape(1, 1, D).astype(jnp.float32)

    out3 = pl.pallas_call(
        _gbn_kernel,
        out_shape=jax.ShapeDtypeStruct((n_chunks, virtual_batch_size, D), x.dtype),
        grid_spec=pltpu.PrefetchScalarGridSpec(
            num_scalar_prefetch=0,
            grid=grid,
            in_specs=[
                pl.BlockSpec((G, virtual_batch_size, D), lambda i: (i, 0, 0)),
                pl.BlockSpec((1, 1, D), lambda i: (0, 0, 0)),
                pl.BlockSpec((1, 1, D), lambda i: (0, 0, 0)),
            ],
            out_specs=pl.BlockSpec((G, virtual_batch_size, D), lambda i: (i, 0, 0)),
        ),
        compiler_params=pltpu.CompilerParams(
            dimension_semantics=("parallel",),
            vmem_limit_bytes=vmem_limit_bytes,
        ),
    )(x3, gamma3, beta3)

    return out3.reshape(B, D)


def gbn_reference(x, gamma, beta, virtual_batch_size):
    """Pure-JAX reference for verification (f32 math, output in x.dtype)."""
    B, D = x.shape
    n = B // virtual_batch_size
    xr = x.astype(jnp.float32).reshape(n, virtual_batch_size, D)
    mean = jnp.mean(xr, axis=1, keepdims=True)
    var = jnp.mean((xr - mean) ** 2, axis=1, keepdims=True)
    y = (xr - mean) / jnp.sqrt(var + EPS) * gamma.reshape(1, 1, D) + beta.reshape(1, 1, D)
    return y.reshape(B, D)


if __name__ == "__main__":
    # Small deterministic setup consistent with GBN(input_dim=32,
    # virtual_batch_size=8) applied to a (32, 32) batch -> 4 ghost batches,
    # G=1 per grid step, grid=(4,) (>= 2 steps per TensorCore on megacore).
    input_dim = 32
    virtual_batch_size = 8
    batch = 32

    key = jax.random.PRNGKey(0)
    kx, kg, kb = jax.random.split(key, 3)
    x = jax.random.normal(kx, (batch, input_dim), dtype=jnp.float32)
    # PyTorch defaults are gamma=1, beta=0; perturb so the affine path is
    # actually exercised.
    gamma = 1.0 + 0.1 * jax.random.normal(kg, (input_dim,), dtype=jnp.float32)
    beta = 0.1 * jax.random.normal(kb, (input_dim,), dtype=jnp.float32)

    # f32 path.
    out = jax.block_until_ready(gbn_forward(x, gamma, beta, virtual_batch_size))
    ref = gbn_reference(x, gamma, beta, virtual_batch_size)
    assert out.shape == (batch, input_dim)
    assert jnp.allclose(out, ref, atol=2e-5, rtol=1e-5)

    # bf16 I/O path: streamed bytes halved, compute stays f32 in-kernel.
    x_bf16 = x.astype(jnp.bfloat16)
    out_bf16 = jax.block_until_ready(
        gbn_forward(x_bf16, gamma, beta, virtual_batch_size))
    assert out_bf16.dtype == jnp.bfloat16
    ref_bf16 = gbn_reference(x_bf16.astype(jnp.float32), gamma, beta,
                             virtual_batch_size)
    assert jnp.allclose(out_bf16.astype(jnp.float32), ref_bf16,
                        atol=5e-2, rtol=5e-2)

    print("KERNEL_OK")
</pallas_src>

<mosaic_0001>
module attributes {stable_mosaic.version = 11 : i64} {
  func.func @_gbn_kernel(%arg0: i32, %arg1: memref<1x8x32xf32, #tpu.memory_space<vmem>>, %arg2: memref<1x1x32xf32, #tpu.memory_space<vmem>>, %arg3: memref<1x1x32xf32, #tpu.memory_space<vmem>>, %arg4: memref<1x8x32xf32, #tpu.memory_space<vmem>>) attributes {dimension_semantics = [#tpu.dimension_semantics<parallel>], iteration_bounds = array<i64: 4>, scalar_prefetch = 0 : i64, scratch_operands = 0 : i64, tpu.core_type = #tpu.core_type<tc>, window_params = [{transform_indices = @transform_0, window_bounds = array<i64: 1, 8, 32>}, {pipeline_mode = #tpu.pipeline_mode<synchronous>, transform_indices = @transform_1, window_bounds = array<i64: 1, 1, 32>}, {pipeline_mode = #tpu.pipeline_mode<synchronous>, transform_indices = @transform_2, window_bounds = array<i64: 1, 1, 32>}, {transform_indices = @transform_3, window_bounds = array<i64: 1, 8, 32>}]} {
    %c0 = arith.constant 0 : index
    %c0_0 = arith.constant 0 : index
    %c0_1 = arith.constant 0 : index
    %0 = vector.load %arg1[%c0, %c0_0, %c0_1] : memref<1x8x32xf32, #tpu.memory_space<vmem>>, vector<1x8x32xf32>
    %cst = arith.constant dense<0.000000e+00> : vector<1x32xf32>
    %1 = vector.multi_reduction <add>, %0, %cst [1] : vector<1x8x32xf32> to vector<1x32xf32>
    %2 = vector.shape_cast %1 : vector<1x32xf32> to vector<1x1x32xf32>
    %cst_2 = arith.constant 8.000000e+00 : f32
    %3 = vector.broadcast %cst_2 : f32 to vector<1x1x32xf32>
    %4 = arith.divf %2, %3 : vector<1x1x32xf32>
    %5 = vector.broadcast %4 : vector<1x1x32xf32> to vector<1x8x32xf32>
    %6 = arith.subf %0, %5 : vector<1x8x32xf32>
    %7 = arith.mulf %6, %6 : vector<1x8x32xf32>
    %cst_3 = arith.constant dense<0.000000e+00> : vector<1x32xf32>
    %8 = vector.multi_reduction <add>, %7, %cst_3 [1] : vector<1x8x32xf32> to vector<1x32xf32>
    %9 = vector.shape_cast %8 : vector<1x32xf32> to vector<1x1x32xf32>
    %cst_4 = arith.constant 8.000000e+00 : f32
    %10 = vector.broadcast %cst_4 : f32 to vector<1x1x32xf32>
    %11 = arith.divf %9, %10 : vector<1x1x32xf32>
    %cst_5 = arith.constant 9.99999974E-6 : f32
    %12 = vector.broadcast %cst_5 : f32 to vector<1x1x32xf32>
    %13 = arith.addf %11, %12 : vector<1x1x32xf32>
    %14 = math.rsqrt %13 : vector<1x1x32xf32>
    %c0_6 = arith.constant 0 : index
    %c0_7 = arith.constant 0 : index
    %c0_8 = arith.constant 0 : index
    %15 = vector.load %arg2[%c0_6, %c0_7, %c0_8] : memref<1x1x32xf32, #tpu.memory_space<vmem>>, vector<1x1x32xf32>
    %16 = arith.mulf %14, %15 : vector<1x1x32xf32>
    %c0_9 = arith.constant 0 : index
    %c0_10 = arith.constant 0 : index
    %c0_11 = arith.constant 0 : index
    %17 = vector.load %arg3[%c0_9, %c0_10, %c0_11] : memref<1x1x32xf32, #tpu.memory_space<vmem>>, vector<1x1x32xf32>
    %18 = arith.mulf %4, %16 : vector<1x1x32xf32>
    %19 = arith.subf %17, %18 : vector<1x1x32xf32>
    %20 = vector.broadcast %16 : vector<1x1x32xf32> to vector<1x8x32xf32>
    %21 = arith.mulf %0, %20 : vector<1x8x32xf32>
    %22 = vector.broadcast %19 : vector<1x1x32xf32> to vector<1x8x32xf32>
    %23 = arith.addf %21, %22 : vector<1x8x32xf32>
    %c0_12 = arith.constant 0 : index
    %c0_13 = arith.constant 0 : index
    %c0_14 = arith.constant 0 : index
    %24 = vector.load %arg4[%c0_12, %c0_13, %c0_14] : memref<1x8x32xf32, #tpu.memory_space<vmem>>, vector<1x8x32xf32>
    tpu.vector_store %arg4[%c0_12, %c0_13, %c0_14], %23 {strides = array<i32>} : memref<1x8x32xf32, #tpu.memory_space<vmem>>, vector<1x8x32xf32>,
    return
  }
  func.func @transform_0(%arg0: i32) -> (i32, i32, i32) {
    %c0_i32 = arith.constant 0 : i32
    %c0_i32_0 = arith.constant 0 : i32
    %c0_i32_1 = arith.constant 0 : i32
    return %arg0, %c0_i32, %c0_i32_0 : i32, i32, i32
  }
  func.func @transform_1(%arg0: i32) -> (i32, i32, i32) {
    %c0_i32 = arith.constant 0 : i32
    %c0_i32_0 = arith.constant 0 : i32
    %c0_i32_1 = arith.constant 0 : i32
    %c0_i32_2 = arith.constant 0 : i32
    return %c0_i32, %c0_i32_0, %c0_i32_1 : i32, i32, i32
  }
  func.func @transform_2(%arg0: i32) -> (i32, i32, i32) {
    %c0_i32 = arith.constant 0 : i32
    %c0_i32_0 = arith.constant 0 : i32
    %c0_i32_1 = arith.constant 0 : i32
    %c0_i32_2 = arith.constant 0 : i32
    return %c0_i32, %c0_i32_0, %c0_i32_1 : i32, i32, i32
  }
  func.func @transform_3(%arg0: i32) -> (i32, i32, i32) {
    %c0_i32 = arith.constant 0 : i32
    %c0_i32_0 = arith.constant 0 : i32
    %c0_i32_1 = arith.constant 0 : i32
    return %arg0, %c0_i32, %c0_i32_0 : i32, i32, i32
  }
}

</mosaic_0001>

<bundles_post_ra>
// kernel: tpu_custom_call.1
= control target key start
LH: loop header
LB: loop body
LE: loop exit
PB: predicated region body
PF: predicated region fallthrough
CT: control target
= control target key end

     0   :  { %8 = vsyncpa [#allocation3], 0  ;;  %s663_s0 = inlined_call_operand.hbm [shape: f32[4,8,32], index: 0, kind: input, shape index: {}]   ;;  %s664_s1 = inlined_call_operand.vmem [shape: f32[1,1,32], index: 1, kind: input, shape index: {}]   ;;  %s665_s2 = inlined_call_operand.vmem [shape: f32[1,1,32], index: 2, kind: input, shape index: {}]   ;;  %s666_s3 = inlined_call_operand.hbm [shape: f32[4,8,32], index: 3, kind: output, shape index: {}]  }
   0x1   :  { %10 = vsyncpa [#allocation3 + $0x1], 0 }
   0x2   :  { %11 = vsyncpa [#allocation4], 0 }
   0x3   :  { %13 = vsyncpa [#allocation4 + $0x1], 0  ;;  %s491_s12 = smov 0   ;;  %s493_s13 = smov 0  }
   0x4   :  { %s495_s14 = smov 0   ;;  %s497_s15 = smov 0  }
   0x5 LB: > { %s512_s16 = sadd.s32 4294967295, %s467_s15   ;;  %s311_s17 = sadd.s32 4294967294, %s467_s15   ;;  %s467_s15 = sphi %s497_s15, %s680_s15   ;;  %s463_s14 = sphi %s495_s14, %s679_s14   ;;  %s459_s13 = sphi %s493_s13, %s678_s13   ;;  %s455_s12 = sphi %s491_s12, %s677_s12  }
   0x6   : > { %s516_s18 = sadd.s32 1, %s467_s15   ;;  %s26_s19 = sadd.s32 1, %s463_s14 }
   0x7   : > { %s23_s20 = ssub.s32 %s467_s15, %s516_s18  ;;  %p33_p0 = scmp.ne.s32.totalorder %s463_s14, %s459_s13 }
   0x8   : > { %p24_p1 = scmp.eq.s32.totalorder %s23_s20, 0  ;;  %p34_p2 = scmp.eq.s32.totalorder %s467_s15, 0 }
   0x9   : > { %p39_p3 = scmp.ne.s32.totalorder %s459_s13, %s455_s12  ;;  %p40_p4 = scmp.eq.s32.totalorder %s512_s16, 0 }
   0xa   : > { %s528_s21 = scalar_select %p24_p1, %s463_s14, %s26_s19  }
   0xb   : > { %p530_p5 = por %p34_p2, %p33_p0  ;;  %p534_p6 = por %p40_p4, %p39_p3 }
   0xc   : > { %p105_p7 = scmp.eq.s32.totalorder %s512_s16, 3  ;;  %p111_p8 = scmp.eq.s32.totalorder %s311_s17, 3 }
   0xd   : > { %p335_p9 = scmp.lt.s32.totalorder %s467_s15, 4  ;;  %s137_s26 = sand.u32 1, %s463_s14  }
   0xe   : > { %p540_p10 = por %p105_p7, %p33_p0  ;;  %p544_p11 = por %p111_p8, %p39_p3 }
   0xf   : > { %s315_s27 = sshll.u32 %s467_s15, 7  ;;  %s314_s28 = sshll.u32 %s137_s26, 3 }
  0x10   : > { %s670_s24 = scalar_select %p540_p10, 1, 0 }
  0x11   : > { %s671_s25 = scalar_select %p544_p11, 1, 0 }
  0x12   : > { %s553_s4 = scalar_lea.hbm %s663_s0, %s315_s27  ;;  %s141_s5 = scalar_lea.vmem [#allocation2], %s314_s28 }
  0x13   : > { %s148_s6 = sshll.u32 %s141_s5, 4  ;;  %p557_p12 = pnand %p335_p9, %p530_p5  ;;  %s561_s6 = int_to_ptr.vmem [resolvable:$true] %s148_s6 }
  0x14   : > { %s138_s8 = scalar_lea.sflag [#allocation3], %s137_s26  ;;  %s371_s9 = scalar_lea.hbm %s553_s4, 128 }
  0x15   : > { %p372_p1 = scmp.ne.s32.totalorder %s553_s4, %s371_s9  ;;  %p373_p2 = pneg %p557_p12 }
  0x16   : > { %s376_s17 = scalar_lea.hbm %s663_s0, 512  ;;  %p377_p5 = scmp.lt.u32.totalorder %s553_s4, %s663_s0 }
  0x17   : > { %p374_p3 = pnand %p373_p2, %p372_p1  ;;  %p378_p7 = scmp.lt.u32.totalorder %s376_s17, %s371_s9 }
  0x18   : > { %p380_p9 = scmp.lt.u32.totalorder %s371_s9, %s553_s4 }
  0x19   : > { %p375_p4 = pneg %p374_p3  ;;  %p379_p8 = por %p378_p7, %p377_p5 }
  0x1b   : > { %p381_p13 = por %p380_p9, %p379_p8 }
  0x1d   : > { %p382_p0 = pnand %p381_p13, %p375_p4 }
  0x1f   : > { %385 = shalt.err (!%p382_p0)
}
  0x20   : > { %s386_s22 = scalar_lea.vmem %s561_s6, 128  ;;  %s469_s26 = smov [#allocation2]  }
  0x21   : > { %p387_p1 = scmp.ne.s32.totalorder %s561_s6, %s386_s22  ;;  %s391_s27 = sshll.u32 %s469_s26, 4  ;;  %s392_s27 = int_to_ptr.vmem [resolvable:$false] %s391_s27 }
  0x22   : > { %s393_s28 = scalar_lea.vmem %s392_s27, 256  ;;  %p394_p10 = scmp.lt.s32.totalorder %s561_s6, %s392_s27 }
  0x23   : > { %p389_p3 = pnand %p387_p1, %p373_p2  ;;  %p395_p5 = scmp.lt.s32.totalorder %s393_s28, %s386_s22 }
  0x25   : > { %p390_p11 = pneg %p389_p3  ;;  %p396_p7 = por %p395_p5, %p394_p10 }
  0x27   : > { %p397_p8 = pnand %p396_p7, %p390_p11 }
  0x29   : > { %400 = shalt.err (!%p397_p8)
}
  0x2a   : > { %330 = dma.hbm_to_vmem [thread:$0]  (!%p557_p12), %s553_s4, 128, %s561_s6, %s138_s8  }
  0x2b   : > { %p673_p13 = scmp.lt.s32.totalorder %s467_s15, 5  ;;  %p674_p0 = scmp.ge.s32.totalorder %s467_s15, 1 }
  0x2d   : > { %p154_p2 = pnand %p674_p0, %p673_p13 }
  0x2e   : > { %s595_s29 = sand.u32 (!%p154_p2), 1, %s459_s13  }
  0x2f   : > { %157 = sbr.rel (%p154_p2) target bundleno = 127 (0x7f), region = 32  ;;  %s317_s30 = sshll.u32 (!%p154_p2), %s595_s29, 3 }
  0x30   : > { %s160_s5 = scalar_lea.sflag (!%p154_p2), [#allocation3], %s595_s29  ;;  %s163_s7 = scalar_lea.vmem (!%p154_p2), [#allocation2], %s317_s30 }
  0x36   : > { %446 = dma.done.wait (%p534_p6), %s160_s5, 128  }
  0x37   : > { %448 = vsyncadd (%p534_p6), %s160_s5, 4294967168  ;;  %vm187_vm0 = vcmask 261120   ;;  %v186_v0 = vld [vmem:[%s163_s7] sm:$0xff]  ;;  %v214_v20 = vlaneseq  ;;  %s185_s9 = scalar_lea.vmem [#allocation5], %s317_s30  ;;  %s320_s11 = sshll.u32 %s512_s16, 7 }
  0x38   : > { %v188_v1 = vsel %vm187_vm0, %v186_v0, 0.0  ;;  %v209_v22 = vld [vmem:[%s664_s1] sm:$0x1]  ;;  %s241_s10 = sshll.u32 %s185_s9, 4  ;;  %s621_s20 = scalar_lea.hbm %s666_s3, %s320_s11  ;;  %s616_s10 = int_to_ptr.vmem [resolvable:$true] %s241_s10 }
  0x39   : > { %v189_v2 = vrot.slane %v188_v1, 4  ;;  %v215_v21 = vshrl.u32 %v214_v20, 7  ;;  %v211_v26 = vld [vmem:[%s665_s2] sm:$0x1]  ;;  %s228_s22 = scalar_lea.sflag [#allocation4], %s595_s29  ;;  %s401_s26 = scalar_lea.vmem %s616_s10, 128 }
  0x3a   : > { %p402_p6 = scmp.ne.s32.totalorder %s616_s10, %s401_s26  ;;  %p675_p10 = scmp.ne.s32.totalorder %s670_s24, 0 }
  0x3b   : > { %v190_v3 = vadd.f32 %v189_v2, %v188_v1  ;;  %v216_v23 = vsub.s32 0, %v215_v21  ;;  %s470_s16 = smov [#allocation5]  }
  0x3c   : > { %p403_p11 = pnand %p402_p6, %p675_p10  ;;  %s405_s27 = sshll.u32 %s470_s16, 4  ;;  %s406_s27 = int_to_ptr.vmem [resolvable:$false] %s405_s27 }
  0x3d   : > { %v191_v4 = vrot.slane %v190_v3, 2  ;;  %s407_s28 = scalar_lea.vmem %s406_s27, 256  ;;  %p408_p4 = scmp.lt.s32.totalorder %s616_s10, %s406_s27 }
  0x3e   : > { %p404_p12 = pneg %p403_p11  ;;  %p409_p9 = scmp.lt.s32.totalorder %s407_s28, %s401_s26 }
  0x3f   : > { %v192_v5 = vadd.f32 %v191_v4, %v190_v3 }
  0x40   : > { %p410_p1 = por %p409_p9, %p408_p4 }
  0x41   : > { %v193_v6 = vrot.slane %v192_v5, 1 }
  0x42   : > { %p411_p3 = pnand %p410_p1, %p404_p12 }
  0x43   : > { %v194_v7 = vadd.f32 %v193_v6, %v192_v5 }
  0x45   : > { %v196_v8 = vmul.f32 0.125, %v194_v7 }
  0x47   : > { %v197_v9 = vsub.f32 %v186_v0, %v196_v8 }
  0x49   : > { %v198_v10 = vmul.f32 %v197_v9, %v197_v9 }
  0x4b   : > { %v199_v11 = vsel %vm187_vm0, %v198_v10, 0.0 }
  0x4c   : > { %v200_v12 = vrot.slane %v199_v11, 4 }
  0x4e   : > { %v201_v13 = vadd.f32 %v200_v12, %v199_v11 }
  0x50   : > { %v202_v14 = vrot.slane %v201_v13, 2 }
  0x52   : > { %v203_v15 = vadd.f32 %v202_v14, %v201_v13 }
  0x54   : > { %v204_v16 = vrot.slane %v203_v15, 1 }
  0x56   : > { %v205_v17 = vadd.f32 %v204_v16, %v203_v15 }
  0x58   : > { %v206_v18 = vmul.f32 0.125, %v205_v17 }
  0x5a   : > { %v207_v19 = vadd.f32 1e-05, %v206_v18 }
  0x5c   : > { %369 = vrsqrt.f32 %v207_v19 }
  0x66   : > { %v370_v24 = vpop.eup %369 }
  0x67   : > { %v210_v25 = vmul.f32 %v370_v24, %v209_v22 }
  0x69   : > { %v212_v27 = vmul.f32 %v210_v25, %v196_v8  ;;  %v217_v28 = vrot.slane %v210_v25, %v216_v23 }
  0x6b   : > { %v213_v29 = vsub.f32 %v211_v26, %v212_v27  ;;  %v218_v30 = vmul.f32 %v217_v28, %v186_v0 }
  0x6d   : > { %v223_v31 = vrot.slane %v213_v29, %v216_v23 }
  0x6f   : > { %v225_v32 = vadd.f32 %v223_v31, %v218_v30 }
  0x71   : > { %226 = vst.msk [vmem:[%s185_s9] sm:$0xff] %vm187_vm0, %v225_v32 }
  0x72   : > { %414 = shalt.err (!%p411_p3)
}
  0x73   : > { %s415_s29 = scalar_lea.hbm %s621_s20, 128  ;;  %s419_s7 = scalar_lea.hbm %s666_s3, 512 }
  0x74   : > { %p416_p5 = scmp.ne.s32.totalorder %s621_s20, %s415_s29  ;;  %p420_p13 = scmp.lt.u32.totalorder %s621_s20, %s666_s3 }
  0x75   : > { %p421_p0 = scmp.lt.u32.totalorder %s419_s7, %s415_s29  ;;  %p423_p6 = scmp.lt.u32.totalorder %s415_s29, %s621_s20 }
  0x76   : > { %p417_p7 = pnand %p416_p5, %p675_p10 }
  0x77   : > { %p422_p2 = por %p421_p0, %p420_p13 }
  0x78   : > { %p418_p8 = pneg %p417_p7 }
  0x79   : > { %p424_p11 = por %p423_p6, %p422_p2 }
  0x7b   : > { %p425_p12 = pnand %p424_p11, %p418_p8 }
  0x7d   : > { %428 = shalt.err (!%p425_p12)
}
  0x7e   : > { %325 = dma.vmem_to_hbm [thread:$0]  (%p675_p10), %s616_s10, 128, %s621_s20, %s228_s22  }
  0x7f PF: > { %p336_p4 = scmp.ge.s32.totalorder %s467_s15, 2  ;;  %s253_s6 = sand.u32 1, %s455_s12  }
  0x80   : > { %p676_p9 = scmp.ne.s32.totalorder %s671_s25, 0  ;;  %s254_s8 = scalar_lea.sflag [#allocation4], %s253_s6 }
  0x82   : > { %p332_p1 = pnand %p336_p4, %p676_p9 }
  0x84   : > { %450 = dma.done.wait (!%p332_p1), %s254_s8, 128  }
  0x85   : > { %452 = vsyncadd (!%p332_p1), %s254_s8, 4294967168  ;;  %p16_p3 = scmp.ge.s32.totalorder %s516_s18, 6   ;;  %s677_s12 = smov %s459_s13 }
  0x86   : > { %s678_s13 = smov %s463_s14  ;;  %s679_s14 = smov %s528_s21 }
  0x87   : > { %s680_s15 = smov %s516_s18  ;;  %18 = sbr.rel (!%p16_p3) target bundleno = 5 (0x5), region = 77 }
  0x8e   :  { %259 = vsyncpa [#allocation3], 1 }
  0x8f   :  { %261 = vsyncpa [#allocation3 + $0x1], 1 }
  0x90   :  { %262 = vsyncpa [#allocation4], 1 }
  0x91   :  { %264 = vsyncpa [#allocation4 + $0x1], 1 }

</bundles_post_ra>
